<compile_context>
chip_gen: v6e
topology: v6e:2x2x1
jax: 0.10.0
libtpu: 0.0.40
codegen_flags: <defaults>
</compile_context>

<pallas_src>
import functools

import numpy as np
import jax
import jax.numpy as jnp
from jax.experimental import pallas as pl
from jax.experimental.pallas import tpu as pltpu

_LANE = 128


def _round_up(n, m):
    return ((n + m - 1) // m) * m


def _pad2d(a, rows, cols):
    pr, pc = rows - a.shape[0], cols - a.shape[1]
    if pr == 0 and pc == 0:
        return a  # no-op if pre-padded
    return jnp.pad(a, ((0, pr), (0, pc)))


def _sublane(dtype):
    return 8 if np.dtype(dtype).itemsize == 4 else 16


def _tile_plan(batch, in_f, out_f, dtype, tm, tn, tk):
    """Clip tile sizes to the (lane-aligned) problem and compute padded dims."""
    sub = _sublane(dtype)
    tn = min(tn, _round_up(out_f, _LANE))
    tk = min(tk, _round_up(in_f, _LANE))
    tm = min(tm, _round_up(batch, sub))
    return tm, tn, tk, _round_up(batch, tm), _round_up(in_f, tk), _round_up(out_f, tn)


def _vmem_limit_bytes(needed):
    """Scoped-VMEM budget clamped to physical capacity (v7x = 64 MiB per TC)."""
    try:
        cap = int(pltpu.get_tpu_info().vmem_capacity_bytes)
        if cap <= 0:
            cap = 64 * 1024 * 1024
    except Exception:
        cap = 64 * 1024 * 1024
    limit = max(needed + (4 << 20), 32 << 20)       # headroom for Mosaic scratch
    return int(min(limit, cap - (8 << 20)))


# ---------------------------------------------------------------------------
# Kernels
# ---------------------------------------------------------------------------
def _mfc_matmul_kernel(*refs, mode, eps, n_valid, matmul_dtype):
    """Tiled x @ W^T with K-accumulation and a mode-dependent epilogue.

    mode == "plain":     + bias
    mode == "bn_fused":  train-mode BatchNorm1d (whole batch is one M block)
    mode == "bn_stats":  emit raw y plus per-block column sum / sum-of-squares
    """
    if mode == "plain":
        x_ref, w_ref, b_ref, o_ref, acc_ref = refs
    elif mode == "bn_fused":
        x_ref, w_ref, g_ref, bt_ref, o_ref, acc_ref = refs
    else:  # "bn_stats"
        x_ref, w_ref, o_ref, stats_ref, acc_ref = refs

    k = pl.program_id(2)

    @pl.when(k == 0)
    def _init():
        acc_ref[...] = jnp.zeros_like(acc_ref)

    x_blk = x_ref[...]
    w_blk = w_ref[...]
    if matmul_dtype is not None:
        # Optional bf16 MXU feed (v6e/v7x) with f32 accumulation.
        x_blk = x_blk.astype(matmul_dtype)
        w_blk = w_blk.astype(matmul_dtype)
    acc_ref[...] += jnp.dot(x_blk, w_blk, preferred_element_type=jnp.float32)

    @pl.when(k == pl.num_programs(2) - 1)
    def _finalize():
        acc = acc_ref[...]
        if mode == "plain":
            o_ref[...] = (acc + b_ref[...].astype(jnp.float32)).astype(o_ref.dtype)
        elif mode == "bn_fused":
            # Bias cancels under BN; padded rows are exactly zero (no bias added),
            # so sums over all rows equal sums over the valid rows -> no row mask.
            inv_n = 1.0 / float(n_valid)
            mean = jnp.sum(acc, axis=0, keepdims=True) * inv_n
            ex2 = jnp.sum(acc * acc, axis=0, keepdims=True) * inv_n
            var = jnp.maximum(ex2 - mean * mean, 0.0)   # clamp one-pass variance
            y = ((acc - mean) * jax.lax.rsqrt(var + eps)
                 * g_ref[...].astype(jnp.float32)
                 + bt_ref[...].astype(jnp.float32))
            o_ref[...] = y.astype(o_ref.dtype)
        else:  # "bn_stats": write bias-free y and per-block partial statistics
            o_ref[...] = acc.astype(o_ref.dtype)
            colsum = jnp.sum(acc, axis=0, keepdims=True)        # (1, tn)
            colsq = jnp.sum(acc * acc, axis=0, keepdims=True)   # (1, tn)
            rows = jax.lax.broadcasted_iota(jnp.int32, stats_ref.shape, 0)
            stats_ref[...] = jnp.where(rows == 0, colsum,
                                       jnp.where(rows == 1, colsq, 0.0))


def _bn_apply_kernel(y_ref, scale_ref, shift_ref, o_ref):
    """Second pass of the two-pass BN: y * scale + shift (per output column)."""
    o_ref[...] = (y_ref[...].astype(jnp.float32) * scale_ref[...]
                  + shift_ref[...]).astype(o_ref.dtype)


# ---------------------------------------------------------------------------
# Wrapper
# ---------------------------------------------------------------------------
def mfc_forward(x, w_t, b=None, gamma=None, beta=None, *, have_bn=False, eps=1e-5,
                out_features=None, tm=512, tn=512, tk=512, matmul_dtype=None):
    """MFC forward: y = x @ W^T + b, optional train-mode BatchNorm1d, eval dropout.

    w_t / b / gamma / beta may be passed pre-padded (see prepad_mfc_params); in that
    case pass out_features explicitly so the logical width is known.
    """
    B, IN = x.shape
    OUT = int(out_features) if out_features is not None else int(w_t.shape[1])

    if have_bn:
        assert B > 1, "train-mode BatchNorm1d requires batch > 1"
        assert gamma is not None and beta is not None
    else:
        assert b is not None

    tm, tn, tk, B_pad, IN_pad, OUT_pad = _tile_plan(B, IN, OUT, x.dtype, tm, tn, tk)
    num_i, num_j, num_k = B_pad // tm, OUT_pad // tn, IN_pad // tk

    x_p = _pad2d(x, B_pad, IN_pad)
    w_p = _pad2d(w_t, IN_pad, OUT_pad)   # no-op when pre-padded at init time

    if have_bn:
        mode = "bn_fused" if num_i == 1 else "bn_stats"
    else:
        mode = "plain"

    in_specs = [
        pl.BlockSpec((tm, tk), lambda i, j, k: (i, k)),
        pl.BlockSpec((tk, tn), lambda i, j, k: (k, j)),
    ]
    operands = [x_p, w_p]
    if mode == "plain":
        in_specs.append(pl.BlockSpec((1, tn), lambda i, j, k: (0, j)))
        operands.append(_pad2d(b, 1, OUT_pad))
    elif mode == "bn_fused":
        in_specs += [pl.BlockSpec((1, tn), lambda i, j, k: (0, j)),
                     pl.BlockSpec((1, tn), lambda i, j, k: (0, j))]
        operands += [_pad2d(gamma, 1, OUT_pad), _pad2d(beta, 1, OUT_pad)]

    # Intermediate y kept in f32 in the two-pass path (stats applied exactly).
    y_dtype = jnp.float32 if mode == "bn_stats" else x.dtype
    out_shapes = [jax.ShapeDtypeStruct((B_pad, OUT_pad), y_dtype)]
    out_specs = [pl.BlockSpec((tm, tn), lambda i, j, k: (i, j))]
    if mode == "bn_stats":
        out_shapes.append(jax.ShapeDtypeStruct((num_i * 8, OUT_pad), jnp.float32))
        out_specs.append(pl.BlockSpec((8, tn), lambda i, j, k: (i, j)))

    itemsize = np.dtype(x.dtype).itemsize
    y_itemsize = np.dtype(y_dtype).itemsize
    vmem_needed = (2 * itemsize * tm * tk            # x tiles (double-buffered)
                   + 2 * itemsize * tk * tn          # w tiles (double-buffered)
                   + 2 * y_itemsize * tm * tn        # out tiles (double-buffered)
                   + 4 * tm * tn                     # f32 accumulator scratch
                   + 2 * 4 * 8 * tn * 4)             # bias / gamma / beta / stats rows

    kernel = functools.partial(_mfc_matmul_kernel, mode=mode, eps=eps,
                               n_valid=B, matmul_dtype=matmul_dtype)

    outs = pl.pallas_call(
        kernel,
        out_shape=out_shapes,
        grid_spec=pltpu.PrefetchScalarGridSpec(
            num_scalar_prefetch=0,
            grid=(num_i, num_j, num_k),
            in_specs=in_specs,
            out_specs=out_specs,
            scratch_shapes=[pltpu.VMEM((tm, tn), jnp.float32)],
        ),
        compiler_params=pltpu.CompilerParams(
            dimension_semantics=("parallel", "parallel", "arbitrary"),
            vmem_limit_bytes=_vmem_limit_bytes(vmem_needed),
        ),
        cost_estimate=pl.CostEstimate(
            flops=2 * B * IN * OUT,
            transcendentals=0,
            # honest re-read accounting: x streamed num_j times, w num_i times
            bytes_accessed=int(itemsize * (num_j * B_pad * IN_pad
                                           + num_i * IN_pad * OUT_pad
                                           + B_pad * OUT_pad)),
        ),
    )(*operands)

    # TODO(synk): dropout is eval-mode identity (torch train-mode RNG stream is not
    # reproducible here).

    if mode != "bn_stats":
        return outs[0][:B, :OUT]

    # ---- two-pass BN: reduce per-block stats (tiny, XLA) then apply scale/shift ----
    y_p, stats = outs
    stats = stats.reshape(num_i, 8, OUT_pad)
    total = jnp.sum(stats[:, 0, :], axis=0)      # (OUT_pad,)
    total_sq = jnp.sum(stats[:, 1, :], axis=0)   # (OUT_pad,)
    inv_n = 1.0 / float(B)
    mean = (total * inv_n)[None, :]
    var = jnp.maximum((total_sq * inv_n)[None, :] - mean * mean, 0.0)
    g_p = _pad2d(gamma, 1, OUT_pad).astype(jnp.float32)
    bt_p = _pad2d(beta, 1, OUT_pad).astype(jnp.float32)
    scale = g_p * jax.lax.rsqrt(var + eps)       # (1, OUT_pad)
    shift = bt_p - mean * scale                  # (1, OUT_pad)

    out_p = pl.pallas_call(
        _bn_apply_kernel,
        out_shape=jax.ShapeDtypeStruct((B_pad, OUT_pad), x.dtype),
        grid_spec=pltpu.PrefetchScalarGridSpec(
            num_scalar_prefetch=0,
            grid=(num_i, num_j),
            in_specs=[pl.BlockSpec((tm, tn), lambda i, j: (i, j)),
                      pl.BlockSpec((1, tn), lambda i, j: (0, j)),
                      pl.BlockSpec((1, tn), lambda i, j: (0, j))],
            out_specs=pl.BlockSpec((tm, tn), lambda i, j: (i, j)),
        ),
        compiler_params=pltpu.CompilerParams(
            dimension_semantics=("parallel", "parallel")),
    )(y_p, scale, shift)
    return out_p[:B, :OUT]


# ---------------------------------------------------------------------------
# Parameter init / pre-padding helpers
# ---------------------------------------------------------------------------
def make_mfc_params(key, fc_layers):
    """Deterministic parameter init matching MFC.init_weights (xavier_init_fc)."""
    in_f, out_f = fc_layers
    r = np.sqrt(6.0) / np.sqrt(in_f + out_f)
    # nn.Linear weight is [out, in]; sample that shape then transpose for the kernel.
    w = jax.random.uniform(key, (out_f, in_f), jnp.float32, minval=-r, maxval=r)
    w_t = jnp.transpose(w)                      # [in, out]
    b = jnp.zeros((1, out_f), jnp.float32)      # fc.bias.data.fill_(0)
    gamma = jnp.ones((1, out_f), jnp.float32)   # BatchNorm1d default affine params
    beta = jnp.zeros((1, out_f), jnp.float32)
    return w_t, b, gamma, beta


def prepad_mfc_params(w_t, b, gamma, beta, *, tn=512, tk=512):
    """Pad params ONCE at init time so mfc_forward does no per-call HBM re-copy."""
    IN, OUT = w_t.shape
    tn_c = min(tn, _round_up(OUT, _LANE))
    tk_c = min(tk, _round_up(IN, _LANE))
    IN_pad, OUT_pad = _round_up(IN, tk_c), _round_up(OUT, tn_c)
    return (_pad2d(w_t, IN_pad, OUT_pad), _pad2d(b, 1, OUT_pad),
            _pad2d(gamma, 1, OUT_pad), _pad2d(beta, 1, OUT_pad), IN, OUT)


# ---------------------------------------------------------------------------
# Self-test
# ---------------------------------------------------------------------------
if __name__ == "__main__":
    # MFC(fc_layers=[32, 64], dropout=0.2, have_dp=True, ...)
    fc_layers = (32, 64)
    batch = 8

    key = jax.random.PRNGKey(0)
    k_x, k_w, k_x2 = jax.random.split(key, 3)

    x = jax.random.normal(k_x, (batch, fc_layers[0]), jnp.float32)
    w_t, b, gamma, beta = make_mfc_params(k_w, fc_layers)
    # Pre-pad params once (no per-call weight pad / HBM re-copy).
    w_p, b_p, g_p, bt_p, IN, OUT = prepad_mfc_params(w_t, b, gamma, beta)

    # --- Config 1: have_bn=False (Linear + eval-mode dropout identity) ---
    out = mfc_forward(x, w_p, b_p, out_features=OUT, have_bn=False)
    out = jax.block_until_ready(out)
    ref = x @ w_t + b
    assert out.shape == (batch, OUT)
    np.testing.assert_allclose(np.asarray(out), np.asarray(ref), rtol=1e-5, atol=1e-5)

    # --- Config 2: have_bn=True, have_last_bn=True (fused single-M-block BN) ---
    out_bn = mfc_forward(x, w_p, gamma=g_p, beta=bt_p, out_features=OUT, have_bn=True)
    out_bn = jax.block_until_ready(out_bn)
    y = x @ w_t + b
    mu = jnp.mean(y, axis=0, keepdims=True)
    va = jnp.mean((y - mu) ** 2, axis=0, keepdims=True)
    ref_bn = (y - mu) * jax.lax.rsqrt(va + 1e-5) * gamma + beta
    np.testing.assert_allclose(np.asarray(out_bn), np.asarray(ref_bn),
                               rtol=1e-4, atol=1e-4)

    # --- Config 3: have_bn=True with multiple M blocks (two-pass stats path) ---
    x2 = jax.random.normal(k_x2, (32, fc_layers[0]), jnp.float32)
    out_bn2 = mfc_forward(x2, w_t, gamma=gamma, beta=beta, have_bn=True, tm=8)
    out_bn2 = jax.block_until_ready(out_bn2)
    y2 = x2 @ w_t + b
    mu2 = jnp.mean(y2, axis=0, keepdims=True)
    va2 = jnp.mean((y2 - mu2) ** 2, axis=0, keepdims=True)
    ref_bn2 = (y2 - mu2) * jax.lax.rsqrt(va2 + 1e-5) * gamma + beta
    np.testing.assert_allclose(np.asarray(out_bn2), np.asarray(ref_bn2),
                               rtol=1e-4, atol=1e-4)

    # --- Config 4: optional bf16 MXU feed (v6e/v7x fast path), loose tolerance ---
    out_bf16 = mfc_forward(x, w_p, b_p, out_features=OUT, have_bn=False,
                           matmul_dtype=jnp.bfloat16)
    out_bf16 = jax.block_until_ready(out_bf16)
    np.testing.assert_allclose(np.asarray(out_bf16), np.asarray(ref),
                               rtol=5e-2, atol=5e-2)

    print("KERNEL_OK")
</pallas_src>

<mosaic_0001>
module attributes {stable_mosaic.version = 11 : i64} {
  func.func @_mfc_matmul_kernel(%arg0: i32, %arg1: i32, %arg2: i32, %arg3: memref<8x128xf32, #tpu.memory_space<vmem>>, %arg4: memref<128x128xf32, #tpu.memory_space<vmem>>, %arg5: memref<1x128xf32, #tpu.memory_space<vmem>>, %arg6: memref<8x128xf32, #tpu.memory_space<vmem>>, %arg7: memref<8x128xf32, #tpu.memory_space<vmem>>) attributes {dimension_semantics = [#tpu.dimension_semantics<parallel>, #tpu.dimension_semantics<parallel>, #tpu.dimension_semantics<arbitrary>], iteration_bounds = array<i64: 1, 1, 1>, scalar_prefetch = 0 : i64, scratch_operands = 1 : i64, tpu.core_type = #tpu.core_type<tc>, window_params = [{transform_indices = @transform_0, window_bounds = array<i64: 8, 128>}, {transform_indices = @transform_1, window_bounds = array<i64: 128, 128>}, {transform_indices = @transform_2, window_bounds = array<i64: 1, 128>}, {transform_indices = @transform_3, window_bounds = array<i64: 8, 128>}]} {
    %c0_i32 = arith.constant 0 : i32
    %0 = arith.cmpi eq, %arg2, %c0_i32 : i32
    %1 = arith.extui %0 : i1 to i32
    %c0_i32_0 = arith.constant 0 : i32
    %2 = arith.cmpi ne, %1, %c0_i32_0 : i32
    scf.if %2 {
      %cst_10 = arith.constant 0.000000e+00 : f32
      %12 = vector.broadcast %cst_10 : f32 to vector<8x128xf32>
      %c0_11 = arith.constant 0 : index
      %c0_12 = arith.constant 0 : index
      %13 = vector.load %arg7[%c0_11, %c0_12] : memref<8x128xf32, #tpu.memory_space<vmem>>, vector<8x128xf32>
      tpu.vector_store %arg7[%c0_11, %c0_12], %12 {strides = array<i32>} : memref<8x128xf32, #tpu.memory_space<vmem>>, vector<8x128xf32>,
    } else {
    }
    %c0 = arith.constant 0 : index
    %c0_1 = arith.constant 0 : index
    %3 = vector.load %arg3[%c0, %c0_1] : memref<8x128xf32, #tpu.memory_space<vmem>>, vector<8x128xf32>
    %c0_2 = arith.constant 0 : index
    %c0_3 = arith.constant 0 : index
    %4 = vector.load %arg4[%c0_2, %c0_3] : memref<128x128xf32, #tpu.memory_space<vmem>>, vector<128x128xf32>
    %c0_4 = arith.constant 0 : index
    %c0_5 = arith.constant 0 : index
    %5 = vector.load %arg7[%c0_4, %c0_5] : memref<8x128xf32, #tpu.memory_space<vmem>>, vector<8x128xf32>
    %cst = arith.constant dense<0.000000e+00> : vector<8x128xf32>
    %6 = tpu.matmul %3, %4, %cst {dimension_numbers = #tpu.dot_dimension_numbers<[1], [0], [0], [1], [0, 0, 1, 1], [], []>} : vector<8x128xf32>, vector<128x128xf32>, vector<8x128xf32> -> vector<8x128xf32>
    %7 = arith.addf %5, %6 : vector<8x128xf32>
    %c0_6 = arith.constant 0 : index
    %c0_7 = arith.constant 0 : index
    %8 = vector.load %arg7[%c0_6, %c0_7] : memref<8x128xf32, #tpu.memory_space<vmem>>, vector<8x128xf32>
    tpu.vector_store %arg7[%c0_6, %c0_7], %7 {strides = array<i32>} : memref<8x128xf32, #tpu.memory_space<vmem>>, vector<8x128xf32>,
    %c0_i32_8 = arith.constant 0 : i32
    %9 = arith.cmpi eq, %arg2, %c0_i32_8 : i32
    %10 = arith.extui %9 : i1 to i32
    %c0_i32_9 = arith.constant 0 : i32
    %11 = arith.cmpi ne, %10, %c0_i32_9 : i32
    scf.if %11 {
      %c0_10 = arith.constant 0 : index
      %c0_11 = arith.constant 0 : index
      %12 = vector.load %arg7[%c0_10, %c0_11] : memref<8x128xf32, #tpu.memory_space<vmem>>, vector<8x128xf32>
      %c0_12 = arith.constant 0 : index
      %c0_13 = arith.constant 0 : index
      %13 = vector.load %arg5[%c0_12, %c0_13] : memref<1x128xf32, #tpu.memory_space<vmem>>, vector<1x128xf32>
      %14 = vector.broadcast %13 : vector<1x128xf32> to vector<8x128xf32>
      %15 = arith.addf %12, %14 : vector<8x128xf32>
      %c0_14 = arith.constant 0 : index
      %c0_15 = arith.constant 0 : index
      %16 = vector.load %arg6[%c0_14, %c0_15] : memref<8x128xf32, #tpu.memory_space<vmem>>, vector<8x128xf32>
      tpu.vector_store %arg6[%c0_14, %c0_15], %15 {strides = array<i32>} : memref<8x128xf32, #tpu.memory_space<vmem>>, vector<8x128xf32>,
    } else {
    }
    return
  }
  func.func @transform_0(%arg0: i32, %arg1: i32, %arg2: i32) -> (i32, i32) {
    %c0_i32 = arith.constant 0 : i32
    return %arg0, %arg2 : i32, i32
  }
  func.func @transform_1(%arg0: i32, %arg1: i32, %arg2: i32) -> (i32, i32) {
    %c0_i32 = arith.constant 0 : i32
    return %arg2, %arg1 : i32, i32
  }
  func.func @transform_2(%arg0: i32, %arg1: i32, %arg2: i32) -> (i32, i32) {
    %c0_i32 = arith.constant 0 : i32
    %c0_i32_0 = arith.constant 0 : i32
    return %c0_i32, %arg1 : i32, i32
  }
  func.func @transform_3(%arg0: i32, %arg1: i32, %arg2: i32) -> (i32, i32) {
    %c0_i32 = arith.constant 0 : i32
    return %arg0, %arg1 : i32, i32
  }
}

</mosaic_0001>

<bundles_post_ra>
// kernel: tpu_custom_call.1
= control target key start
LH: loop header
LB: loop body
LE: loop exit
PB: predicated region body
PF: predicated region fallthrough
CT: control target
= control target key end

     0   :  { %8 = vsyncpa [#allocation4], 0  ;;  %s330_s0 = inlined_call_operand.hbm [shape: f32[8,128], index: 0, kind: input, shape index: {}]   ;;  %s331_s1 = inlined_call_operand.hbm [shape: f32[128,128], index: 1, kind: input, shape index: {}]   ;;  %s332_s2 = inlined_call_operand.vmem [shape: f32[1,128], index: 2, kind: input, shape index: {}]   ;;  %s333_s3 = inlined_call_operand.hbm [shape: f32[8,128], index: 3, kind: output, shape index: {}]  }
   0x1   :  { %9 = vsyncpa [#allocation7], 0 }
   0x2   :  { %10 = vsyncpa [#allocation5], 0  ;;  %s291_s12 = smov [#allocation3]   ;;  %s292_s14 = smov [#allocation6]  }
   0x3   :  { %s17_s13 = sshll.u32 %s291_s12, 4  ;;  %s26_s15 = sshll.u32 %s292_s14, 4  ;;  %s18_s13 = int_to_ptr.vmem [resolvable:$true] %s17_s13  ;;  %s27_s15 = int_to_ptr.vmem [resolvable:$true] %s26_s15 }
   0x4   :  { %s233_s16 = scalar_lea.vmem %s18_s13, 128  ;;  %p238_p1 = scmp.lt.s32.totalorder %s18_s13, %s18_s13 }
   0x5   :  { %p234_p0 = scmp.ne.s32.totalorder %s18_s13, %s233_s16  ;;  %p239_p2 = scmp.lt.s32.totalorder %s233_s16, %s233_s16 }
   0x7   :  { %p240_p3 = por %p239_p2, %p238_p1 }
   0x9   :  { %p241_p4 = pnand %p240_p3, %p234_p0 }
   0xb   :  { %244 = shalt.err (!%p241_p4)
}
   0xc   :  { %20 = dma.hbm_to_vmem [thread:$0]  %s330_s0, 128, %s18_s13, [#allocation4]  }
   0xd   :  { %s253_s19 = scalar_lea.vmem %s27_s15, 2048  ;;  %p258_p6 = scmp.lt.s32.totalorder %s27_s15, %s27_s15 }
   0xe   :  { %p254_p5 = scmp.ne.s32.totalorder %s27_s15, %s253_s19  ;;  %p259_p7 = scmp.lt.s32.totalorder %s253_s19, %s253_s19 }
  0x10   :  { %p260_p8 = por %p259_p7, %p258_p6 }
  0x12   :  { %p261_p9 = pnand %p260_p8, %p254_p5 }
  0x14   :  { %264 = shalt.err (!%p261_p9)
}
  0x15   :  { %s293_s20 = smov 128   ;;  %s294_s21 = smov 8  }
  0x16   :  { %32 = dma.hbm_to_vmem [thread:$0]  %s331_s1, 2048, %s27_s15, [#allocation7], %s293_s20, %s293_s20, %s294_s21  }
  0x17   :  { %285 = dma.done.wait [#allocation4], 128  }
  0x18   :  { %286 = vsyncadd [#allocation4], 4294967168 }
  0x19   :  { %287 = dma.done.wait [#allocation7], 2048  }
  0x1a   :  { %288 = vsyncadd [#allocation7], 4294965248  ;;  %v295_v0 = vmov 0.0   ;;  %vm296_vm0 = vmmov 0   ;;  %v62_v1 = vld [vmem:[#allocation6 + $0x78] sm:$0xff]  ;;  %v61_v2 = vld [vmem:[#allocation6 + $0x70] sm:$0xff] }
  0x1b   :  { %183 = vmatprep.subr.mxu0 %v295_v0  ;;  %215 = vmatprep.mubr.msk.f32.mxu0 %vm296_vm0, %v295_v0  ;;  %v60_v3 = vld [vmem:[#allocation6 + $0x68] sm:$0xff]  ;;  %v59_v4 = vld [vmem:[#allocation6 + $0x60] sm:$0xff]  ;;  %v58_v5 = vld [vmem:[#allocation6 + $0x58] sm:$0xff]  ;;  %s297_s24 = smov [#allocation8]  }
  0x1c   :  { %184 = vmatpush3.msra.mxu0 %v62_v1  ;;  %v57_v6 = vld [vmem:[#allocation6 + $0x50] sm:$0xff]  ;;  %v56_v7 = vld [vmem:[#allocation6 + $0x48] sm:$0xff]  ;;  %v55_v8 = vld [vmem:[#allocation6 + $0x40] sm:$0xff]  ;;  %s155_s25 = sshll.u32 %s297_s24, 4  ;;  %s156_s25 = int_to_ptr.vmem [resolvable:$true] %s155_s25 }
  0x1d   :  { %185 = vmatprep.subr.mxu0 %v295_v0  ;;  %v54_v9 = vld [vmem:[#allocation6 + $0x38] sm:$0xff]  ;;  %v53_v10 = vld [vmem:[#allocation6 + $0x30] sm:$0xff]  ;;  %v52_v11 = vld [vmem:[#allocation6 + $0x28] sm:$0xff]  ;;  %s265_s26 = scalar_lea.vmem %s156_s25, 128  ;;  %p270_p11 = scmp.lt.s32.totalorder %s156_s25, %s156_s25 }
  0x1e   :  { %186 = vmatpush3.msra.mxu0 %v61_v2  ;;  %v51_v12 = vld [vmem:[#allocation6 + $0x20] sm:$0xff]  ;;  %v50_v13 = vld [vmem:[#allocation6 + $0x18] sm:$0xff]  ;;  %v49_v14 = vld [vmem:[#allocation6 + $0x10] sm:$0xff]  ;;  %p266_p10 = scmp.ne.s32.totalorder %s156_s25, %s265_s26  ;;  %p271_p12 = scmp.lt.s32.totalorder %s265_s26, %s265_s26 }
  0x1f   :  { %187 = vmatprep.subr.mxu0 %v295_v0  ;;  %v48_v15 = vld [vmem:[#allocation6 + $0x8] sm:$0xff]  ;;  %v47_v16 = vld [vmem:[#allocation6] sm:$0xff]  ;;  %v46_v17 = vld [vmem:[#allocation3] sm:$0xff] }
  0x20   :  { %188 = vmatpush3.msra.mxu0 %v60_v3  ;;  %v165_v18 = vld [vmem:[%s332_s2] ss:$0 sm:$0xff]  ;;  %p272_p13 = por %p271_p12, %p270_p11 }
  0x21   :  { %189 = vmatprep.subr.mxu0 %v295_v0 }
  0x22   :  { %190 = vmatpush3.msra.mxu0 %v59_v4  ;;  %p273_p0 = pnand %p272_p13, %p266_p10 }
  0x23   :  { %191 = vmatprep.subr.mxu0 %v295_v0 }
  0x24   :  { %192 = vmatpush3.msra.mxu0 %v58_v5 }
  0x25   :  { %193 = vmatprep.subr.mxu0 %v295_v0 }
  0x26   :  { %194 = vmatpush3.msra.mxu0 %v57_v6 }
  0x27   :  { %195 = vmatprep.subr.mxu0 %v295_v0 }
  0x28   :  { %196 = vmatpush3.msra.mxu0 %v56_v7 }
  0x29   :  { %197 = vmatprep.subr.mxu0 %v295_v0 }
  0x2a   :  { %198 = vmatpush3.msra.mxu0 %v55_v8 }
  0x2b   :  { %199 = vmatprep.subr.mxu0 %v295_v0 }
  0x2c   :  { %200 = vmatpush3.msra.mxu0 %v54_v9 }
  0x2d   :  { %201 = vmatprep.subr.mxu0 %v295_v0 }
  0x2e   :  { %202 = vmatpush3.msra.mxu0 %v53_v10 }
  0x2f   :  { %203 = vmatprep.subr.mxu0 %v295_v0 }
  0x30   :  { %204 = vmatpush3.msra.mxu0 %v52_v11 }
  0x31   :  { %205 = vmatprep.subr.mxu0 %v295_v0 }
  0x32   :  { %206 = vmatpush3.msra.mxu0 %v51_v12 }
  0x33   :  { %207 = vmatprep.subr.mxu0 %v295_v0 }
  0x34   :  { %208 = vmatpush3.msra.mxu0 %v50_v13 }
  0x35   :  { %209 = vmatprep.subr.mxu0 %v295_v0 }
  0x36   :  { %210 = vmatpush3.msra.mxu0 %v49_v14 }
  0x37   :  { %211 = vmatprep.subr.mxu0 %v295_v0 }
  0x38   :  { %212 = vmatpush3.msra.mxu0 %v48_v15 }
  0x39   :  { %213 = vmatprep.subr.mxu0 %v295_v0 }
  0x3a   :  { %214 = vmatpush3.msra.mxu0 %v47_v16 }
  0x3b   :  { %216 = vmatmul.mubr.f32.vlgmr.msra.gmra.mxu0 %v46_v17 }
  0xfb   :  { %v130_v19 = vpop.f32.mrf.mxu0 }
  0xfc   :  { %v147_v20 = vadd.f32 %v165_v18, %v130_v19 }
  0xfd   :  { %v217_v21 = vpop.f32.mrf.mxu0 }
  0xfe   :  { %148 = vst [vmem:[#allocation8] sm:$0xff] %v147_v20 }
  0xff   :  { %276 = shalt.err (!%p273_p0)
}
 0x100   :  { %158 = dma.vmem_to_hbm [thread:$0]  %s156_s25, 128, %s333_s3, [#allocation5]  }
 0x101   :  { %289 = dma.done.wait [#allocation5], 128  }
 0x102   :  { %290 = vsyncadd [#allocation5], 4294967168 }
 0x103   :  { %162 = vsyncpa [#allocation4], 1 }
 0x104   :  { %163 = vsyncpa [#allocation7], 1 }
 0x105   :  { %164 = vsyncpa [#allocation5], 1 }

</bundles_post_ra>
